<compile_context>
chip_gen: v7x
topology: tpu7x:2x2x1
jax: 0.10.0
libtpu: 0.0.40
codegen_flags: <defaults>
</compile_context>

<pallas_src>
import jax
import jax.numpy as jnp
from jax import lax
from jax.experimental import pallas as pl
from jax.experimental.pallas import tpu as pltpu


def _round_up(x, m):
    return (x + m - 1) // m * m


def _geglu_kernel(x_ref, wv_ref, wg_ref, bv_ref, bg_ref, o_ref):
    # x_ref: (tm, K)   wv_ref/wg_ref: (K, tn)   bv_ref/bg_ref: (1, tn)   o_ref: (tm, tn)
    x = x_ref[...]
    val = jnp.dot(x, wv_ref[...], preferred_element_type=jnp.float32)
    gate = jnp.dot(x, wg_ref[...], preferred_element_type=jnp.float32)
    val = val + bv_ref[...].astype(jnp.float32)
    gate = gate + bg_ref[...].astype(jnp.float32)
    # exact (erf-based) GELU, matching torch.nn.functional.gelu default
    gelu_gate = 0.5 * gate * (1.0 + lax.erf(gate * 0.7071067811865476))
    o_ref[...] = (val * gelu_gate).astype(o_ref.dtype)


def prepare_geglu_params(weight, bias, *, param_dtype=None):
    """One-time (out of the hot path) split + transpose of the fused Linear params.

    weight: (2*dim_out, dim_in)  -- PyTorch nn.Linear layout
    bias:   (2*dim_out,)
    param_dtype: optional dtype (e.g. jnp.bfloat16) to stream weights on the MXU.
    Returns (w_val_t, w_gate_t, b_val, b_gate); w_*_t have shape (dim_in, dim_out).
    """
    two_dim_out, _ = weight.shape
    dim_out = two_dim_out // 2
    w = weight.astype(param_dtype) if param_dtype is not None else weight
    w_val_t = jnp.transpose(w[:dim_out, :])
    w_gate_t = jnp.transpose(w[dim_out:, :])
    b_val = bias[:dim_out].reshape(1, dim_out)
    b_gate = bias[dim_out:].reshape(1, dim_out)
    return w_val_t, w_gate_t, b_val, b_gate


def geglu_pallas(x, w_val_t, w_gate_t, b_val, b_gate, *, tile_m=256, tile_n=512):
    """GEGLU forward: (x @ W_val + b_val) * gelu(x @ W_gate + b_gate).

    x: (B, S, dim_in);  w_*_t: (dim_in, dim_out);  b_*: (1, dim_out)
    returns (B, S, dim_out) in x.dtype
    """
    B, S, dim_in = x.shape
    dim_out = w_val_t.shape[1]
    out_dtype = x.dtype

    n_rows = B * S
    x2d = x.reshape(n_rows, dim_in)
    if x2d.dtype != w_val_t.dtype:           # match streamed weight dtype on the MXU
        x2d = x2d.astype(w_val_t.dtype)

    # --- tile sizes: rows multiple of 8 sublanes, features multiple of 128 lanes
    m_min = _round_up(n_rows, 8)
    tm = min(tile_m, m_min)
    m_pad = _round_up(n_rows, tm)

    n_min = _round_up(dim_out, 128)
    tn = min(tile_n, n_min)
    if n_min % tn != 0:
        tn = 128                              # always divides n_min; minimal padding
    n_pad = n_min

    # --- wrapper-side zero padding (cheaper than per-row masking in the kernel)
    if m_pad != n_rows:
        x2d = jnp.pad(x2d, ((0, m_pad - n_rows), (0, 0)))
    if n_pad != dim_out:
        padn = ((0, 0), (0, n_pad - dim_out))
        w_val_t = jnp.pad(w_val_t, padn)
        w_gate_t = jnp.pad(w_gate_t, padn)
        b_val = jnp.pad(b_val, padn)
        b_gate = jnp.pad(b_gate, padn)

    grid = (m_pad // tm, n_pad // tn)

    # --- VMEM budget / cost hints
    isz = lambda a: jnp.dtype(a.dtype).itemsize
    out_isz = jnp.dtype(out_dtype).itemsize
    per_step = (tm * dim_in * isz(x2d)
                + 2 * dim_in * tn * isz(w_val_t)
                + 2 * tn * isz(b_val)
                + tm * tn * out_isz)
    # double-buffered tiles + slack; sized so the same code also fits v7x's 64 MiB VMEM
    vmem_limit = int(min(max(2 * per_step + (4 << 20), 32 << 20), 96 << 20))

    cost = pl.CostEstimate(
        flops=4 * m_pad * dim_in * n_pad,          # two (m,k)x(k,n) matmuls
        transcendentals=m_pad * n_pad,             # one erf per output element
        bytes_accessed=(x2d.size * isz(x2d)
                        + 2 * w_val_t.size * isz(w_val_t)
                        + 2 * b_val.size * isz(b_val)
                        + m_pad * n_pad * out_isz),
    )

    # Grid order (M outer, N inner): the x row-tile is the block held constant
    # along the inner axis (never re-fetched); weight/bias tiles stream per N step.
    out2d = pl.pallas_call(
        _geglu_kernel,
        out_shape=jax.ShapeDtypeStruct((m_pad, n_pad), out_dtype),
        grid_spec=pltpu.PrefetchScalarGridSpec(
            num_scalar_prefetch=0,
            grid=grid,
            in_specs=[
                pl.BlockSpec((tm, dim_in), lambda i, j: (i, 0)),   # x rows
                pl.BlockSpec((dim_in, tn), lambda i, j: (0, j)),   # W_val^T
                pl.BlockSpec((dim_in, tn), lambda i, j: (0, j)),   # W_gate^T
                pl.BlockSpec((1, tn), lambda i, j: (0, j)),        # b_val
                pl.BlockSpec((1, tn), lambda i, j: (0, j)),        # b_gate
            ],
            out_specs=pl.BlockSpec((tm, tn), lambda i, j: (i, j)),
        ),
        compiler_params=pltpu.CompilerParams(
            dimension_semantics=("parallel", "parallel"),
            vmem_limit_bytes=vmem_limit,
        ),
        cost_estimate=cost,
    )(x2d, w_val_t, w_gate_t, b_val, b_gate)

    return out2d[:n_rows, :dim_out].reshape(B, S, dim_out)


def geglu_reference(x, weight, bias):
    h = jnp.einsum("bsi,oi->bso", x, weight) + bias
    dim_out = weight.shape[0] // 2
    val, gate = h[..., :dim_out], h[..., dim_out:]
    return val * (0.5 * gate * (1.0 + lax.erf(gate / jnp.sqrt(2.0))))


def _make_params(key, dim_in, dim_out, dtype=jnp.float32):
    kw, kb = jax.random.split(key)
    bound = 1.0 / (dim_in ** 0.5)
    weight = jax.random.uniform(kw, (2 * dim_out, dim_in),
                                minval=-bound, maxval=bound, dtype=dtype)
    bias = jax.random.uniform(kb, (2 * dim_out,),
                              minval=-bound, maxval=bound, dtype=dtype)
    return weight, bias


if __name__ == "__main__":
    key = jax.random.PRNGKey(0)
    k1, k2, k3, k4 = jax.random.split(key, 4)

    # Case 1: small shapes consistent with GEGLU (batch=2, seq=8, dim_in=32, dim_out=32)
    B, S, dim_in, dim_out = 2, 8, 32, 32
    x = jax.random.normal(k1, (B, S, dim_in), dtype=jnp.float32)
    weight, bias = _make_params(k2, dim_in, dim_out)
    params = prepare_geglu_params(weight, bias)       # one-time transpose/split
    out = jax.block_until_ready(geglu_pallas(x, *params))
    ref = geglu_reference(x, weight, bias)
    assert out.shape == (B, S, dim_out)
    assert jnp.allclose(out, ref, atol=2e-5, rtol=2e-5), "case 1 mismatch vs reference"

    # Case 2: non-tile-aligned rows and dim_out exercise the padding path.
    B2, S2, din2, dout2 = 3, 25, 48, 72
    x2 = jax.random.normal(k3, (B2, S2, din2), dtype=jnp.float32)
    w2, b2 = _make_params(k4, din2, dout2)
    out2 = jax.block_until_ready(geglu_pallas(x2, *prepare_geglu_params(w2, b2)))
    ref2 = geglu_reference(x2, w2, b2)
    assert out2.shape == (B2, S2, dout2)
    assert jnp.allclose(out2, ref2, atol=2e-5, rtol=2e-5), "case 2 mismatch vs reference"

    print("KERNEL_OK")
</pallas_src>

<mosaic_0001>
module attributes {stable_mosaic.version = 11 : i64} {
  func.func @_geglu_kernel(%arg0: i32, %arg1: i32, %arg2: memref<16x32xf32, #tpu.memory_space<vmem>>, %arg3: memref<32x128xf32, #tpu.memory_space<vmem>>, %arg4: memref<32x128xf32, #tpu.memory_space<vmem>>, %arg5: memref<1x128xf32, #tpu.memory_space<vmem>>, %arg6: memref<1x128xf32, #tpu.memory_space<vmem>>, %arg7: memref<16x128xf32, #tpu.memory_space<vmem>>) attributes {dimension_semantics = [#tpu.dimension_semantics<parallel>, #tpu.dimension_semantics<parallel>], iteration_bounds = array<i64: 1, 1>, scalar_prefetch = 0 : i64, scratch_operands = 0 : i64, tpu.core_type = #tpu.core_type<tc>, window_params = [{transform_indices = @transform_0, window_bounds = array<i64: 16, 32>}, {transform_indices = @transform_1, window_bounds = array<i64: 32, 128>}, {transform_indices = @transform_2, window_bounds = array<i64: 32, 128>}, {transform_indices = @transform_3, window_bounds = array<i64: 1, 128>}, {transform_indices = @transform_4, window_bounds = array<i64: 1, 128>}, {transform_indices = @transform_5, window_bounds = array<i64: 16, 128>}]} {
    %c0 = arith.constant 0 : index
    %c0_0 = arith.constant 0 : index
    %0 = vector.load %arg2[%c0, %c0_0] : memref<16x32xf32, #tpu.memory_space<vmem>>, vector<16x32xf32>
    %c0_1 = arith.constant 0 : index
    %c0_2 = arith.constant 0 : index
    %1 = vector.load %arg3[%c0_1, %c0_2] : memref<32x128xf32, #tpu.memory_space<vmem>>, vector<32x128xf32>
    %cst = arith.constant dense<0.000000e+00> : vector<16x128xf32>
    %2 = tpu.matmul %0, %1, %cst {dimension_numbers = #tpu.dot_dimension_numbers<[1], [0], [0], [1], [0, 0, 1, 1], [], []>} : vector<16x32xf32>, vector<32x128xf32>, vector<16x128xf32> -> vector<16x128xf32>
    %c0_3 = arith.constant 0 : index
    %c0_4 = arith.constant 0 : index
    %3 = vector.load %arg4[%c0_3, %c0_4] : memref<32x128xf32, #tpu.memory_space<vmem>>, vector<32x128xf32>
    %cst_5 = arith.constant dense<0.000000e+00> : vector<16x128xf32>
    %4 = tpu.matmul %0, %3, %cst_5 {dimension_numbers = #tpu.dot_dimension_numbers<[1], [0], [0], [1], [0, 0, 1, 1], [], []>} : vector<16x32xf32>, vector<32x128xf32>, vector<16x128xf32> -> vector<16x128xf32>
    %c0_6 = arith.constant 0 : index
    %c0_7 = arith.constant 0 : index
    %5 = vector.load %arg5[%c0_6, %c0_7] : memref<1x128xf32, #tpu.memory_space<vmem>>, vector<1x128xf32>
    %6 = vector.broadcast %5 : vector<1x128xf32> to vector<16x128xf32>
    %7 = arith.addf %2, %6 : vector<16x128xf32>
    %c0_8 = arith.constant 0 : index
    %c0_9 = arith.constant 0 : index
    %8 = vector.load %arg6[%c0_8, %c0_9] : memref<1x128xf32, #tpu.memory_space<vmem>>, vector<1x128xf32>
    %9 = vector.broadcast %8 : vector<1x128xf32> to vector<16x128xf32>
    %10 = arith.addf %4, %9 : vector<16x128xf32>
    %cst_10 = arith.constant 5.000000e-01 : f32
    %11 = vector.broadcast %cst_10 : f32 to vector<16x128xf32>
    %12 = arith.mulf %11, %10 : vector<16x128xf32>
    %cst_11 = arith.constant 0.707106769 : f32
    %13 = vector.broadcast %cst_11 : f32 to vector<16x128xf32>
    %14 = arith.mulf %10, %13 : vector<16x128xf32>
    %15 = math.erf %14 : vector<16x128xf32>
    %cst_12 = arith.constant 1.000000e+00 : f32
    %16 = vector.broadcast %cst_12 : f32 to vector<16x128xf32>
    %17 = arith.addf %16, %15 : vector<16x128xf32>
    %18 = arith.mulf %12, %17 : vector<16x128xf32>
    %19 = arith.mulf %7, %18 : vector<16x128xf32>
    %c0_13 = arith.constant 0 : index
    %c0_14 = arith.constant 0 : index
    %20 = vector.load %arg7[%c0_13, %c0_14] : memref<16x128xf32, #tpu.memory_space<vmem>>, vector<16x128xf32>
    tpu.vector_store %arg7[%c0_13, %c0_14], %19 {strides = array<i32>} : memref<16x128xf32, #tpu.memory_space<vmem>>, vector<16x128xf32>,
    return
  }
  func.func @transform_0(%arg0: i32, %arg1: i32) -> (i32, i32) {
    %c0_i32 = arith.constant 0 : i32
    %c0_i32_0 = arith.constant 0 : i32
    return %arg0, %c0_i32 : i32, i32
  }
  func.func @transform_1(%arg0: i32, %arg1: i32) -> (i32, i32) {
    %c0_i32 = arith.constant 0 : i32
    %c0_i32_0 = arith.constant 0 : i32
    return %c0_i32, %arg1 : i32, i32
  }
  func.func @transform_2(%arg0: i32, %arg1: i32) -> (i32, i32) {
    %c0_i32 = arith.constant 0 : i32
    %c0_i32_0 = arith.constant 0 : i32
    return %c0_i32, %arg1 : i32, i32
  }
  func.func @transform_3(%arg0: i32, %arg1: i32) -> (i32, i32) {
    %c0_i32 = arith.constant 0 : i32
    %c0_i32_0 = arith.constant 0 : i32
    return %c0_i32, %arg1 : i32, i32
  }
  func.func @transform_4(%arg0: i32, %arg1: i32) -> (i32, i32) {
    %c0_i32 = arith.constant 0 : i32
    %c0_i32_0 = arith.constant 0 : i32
    return %c0_i32, %arg1 : i32, i32
  }
  func.func @transform_5(%arg0: i32, %arg1: i32) -> (i32, i32) {
    %c0_i32 = arith.constant 0 : i32
    return %arg0, %arg1 : i32, i32
  }
}

</mosaic_0001>

<bundles_post_ra>
// kernel: tpu_custom_call.1
= control target key start
LH: loop header
LB: loop body
LE: loop exit
PB: predicated region body
PF: predicated region fallthrough
CT: control target
= control target key end

     0   :  { %10 = vsyncpa [#allocation3], 0  ;;  %s548_s0 = inlined_call_operand.hbm [shape: f32[16,32], index: 0, kind: input, shape index: {}]   ;;  %s549_s1 = inlined_call_operand.hbm [shape: f32[32,128], index: 1, kind: input, shape index: {}]   ;;  %s550_s2 = inlined_call_operand.hbm [shape: f32[32,128], index: 2, kind: input, shape index: {}]   ;;  %s551_s3 = inlined_call_operand.vmem [shape: f32[1,128], index: 3, kind: input, shape index: {}]   ;;  %s552_s4 = inlined_call_operand.vmem [shape: f32[1,128], index: 4, kind: input, shape index: {}]   ;;  %s553_s5 = inlined_call_operand.hbm [shape: f32[16,128], index: 5, kind: output, shape index: {}]  }
   0x1   :  { %11 = vsyncpa [#allocation6], 0 }
   0x2   :  { %12 = vsyncpa [#allocation4], 0  ;;  %s435_s18 = smov [#allocation5]   ;;  %s436_s20 = smov [#allocation2]  }
   0x3   :  { %s30_s19 = sshll.u32 %s435_s18, 4  ;;  %s18_s21 = sshll.u32 %s436_s20, 4  ;;  %s31_s19 = int_to_ptr.vmem [resolvable:$true] %s30_s19  ;;  %s471_s21 = int_to_ptr.vmem [resolvable:$true] %s18_s21 }
   0x4   :  { %s341_s24 = scalar_lea.hbm %s549_s1, 512 }
   0x5   :  { %p342_p0 = scmp.ne.s32.totalorder %s549_s1, %s341_s24  ;;  %p345_p1 = scmp.lt.u32.totalorder %s341_s24, %s549_s1 }
   0x7   :  { %p347_p2 = pnand %p345_p1, %p342_p0 }
   0x9   :  { %350 = shalt.err (!%p347_p2)
}
   0xa   :  { %s351_s29 = scalar_lea.vmem %s31_s19, 512  ;;  %p356_p4 = scmp.lt.s32.totalorder %s31_s19, %s31_s19 }
   0xb   :  { %p352_p3 = scmp.ne.s32.totalorder %s31_s19, %s351_s29  ;;  %p357_p5 = scmp.lt.s32.totalorder %s351_s29, %s351_s29 }
   0xd   :  { %p358_p6 = por %p357_p5, %p356_p4 }
   0xf   :  { %p359_p7 = pnand %p358_p6, %p352_p3 }
  0x11   :  { %362 = shalt.err (!%p359_p7)
}
  0x12   :  { %s437_s30 = smov 128   ;;  %s438_s6 = smov 8  }
  0x13   :  { %36 = dma.hbm_to_vmem [thread:$0]  %s549_s1, 512, %s31_s19, [#allocation6], %s437_s30, %s437_s30, %s438_s6  }
  0x14   :  { %s363_s11 = scalar_lea.hbm %s548_s0, 256 }
  0x15   :  { %p364_p8 = scmp.ne.s32.totalorder %s548_s0, %s363_s11  ;;  %p367_p9 = scmp.lt.u32.totalorder %s363_s11, %s548_s0 }
  0x17   :  { %p369_p10 = pnand %p367_p9, %p364_p8 }
  0x19   :  { %372 = shalt.err (!%p369_p10)
}
  0x1a   :  { %s373_s16 = scalar_lea.vmem %s471_s21, 256  ;;  %p378_p12 = scmp.lt.s32.totalorder %s471_s21, %s471_s21 }
  0x1b   :  { %p374_p11 = scmp.ne.s32.totalorder %s471_s21, %s373_s16  ;;  %p379_p13 = scmp.lt.s32.totalorder %s373_s16, %s373_s16 }
  0x1d   :  { %p380_p0 = por %p379_p13, %p378_p12 }
  0x1f   :  { %p381_p1 = pnand %p380_p0, %p374_p11 }
  0x21   :  { %384 = shalt.err (!%p381_p1)
}
  0x22   :  { %24 = dma.hbm_to_vmem [thread:$0]  %s548_s0, 256, %s471_s21, [#allocation3], %s437_s30, %s437_s30, %s438_s6  }
  0x23   :  { %s439_s18 = smov [#allocation7]   ;;  %s385_s23 = scalar_lea.hbm %s550_s2, 512 }
  0x24   :  { %s42_s19 = sshll.u32 %s439_s18, 4  ;;  %p386_p2 = scmp.ne.s32.totalorder %s550_s2, %s385_s23  ;;  %s43_s19 = int_to_ptr.vmem [resolvable:$true] %s42_s19 }
  0x25   :  { %p389_p3 = scmp.lt.u32.totalorder %s385_s23, %s550_s2 }
  0x27   :  { %p391_p4 = pnand %p389_p3, %p386_p2 }
  0x29   :  { %394 = shalt.err (!%p391_p4)
}
  0x2a   :  { %s395_s28 = scalar_lea.vmem %s43_s19, 512  ;;  %p400_p6 = scmp.lt.s32.totalorder %s43_s19, %s43_s19 }
  0x2b   :  { %p396_p5 = scmp.ne.s32.totalorder %s43_s19, %s395_s28  ;;  %p401_p7 = scmp.lt.s32.totalorder %s395_s28, %s395_s28 }
  0x2d   :  { %p402_p8 = por %p401_p7, %p400_p6 }
  0x2f   :  { %p403_p9 = pnand %p402_p8, %p396_p5 }
  0x31   :  { %406 = shalt.err (!%p403_p9)
}
  0x32   :  { %48 = dma.hbm_to_vmem [thread:$0]  %s550_s2, 512, %s43_s19, [#allocation6], %s437_s30, %s437_s30, %s438_s6  }
  0x33   :  { %429 = dma.done.wait [#allocation3], 256  }
  0x34   :  { %430 = vsyncadd [#allocation3], 4294967040 }
  0x35   :  { %431 = dma.done.wait [#allocation6], 1024  }
  0x36   :  { %432 = vsyncadd [#allocation6], 4294966272  ;;  %vm79_vm0 = vcmask 261120   ;;  %v68_v0 = vld [vmem:[#allocation7] sm:$0xff]  ;;  %v69_v1 = vld [vmem:[#allocation7 + $0x8] sm:$0xff] }
  0x37   :  { %v70_v2 = vld [vmem:[#allocation7 + $0x10] sm:$0xff]  ;;  %v323_v3 = vpack.c.bf16 %v69_v1, %v68_v0  ;;  %v71_v4 = vld [vmem:[#allocation7 + $0x18] sm:$0xff]  ;;  %v64_v7 = vld [vmem:[#allocation5] sm:$0xff] }
  0x38   :  { %v62_v5 = vld [vmem:[#allocation2] sm:$0xff]  ;;  %v327_v6 = vpack.c.bf16 %v71_v4, %v70_v2  ;;  %v65_v8 = vld [vmem:[#allocation5 + $0x8] sm:$0xff]  ;;  %v67_v11 = vld [vmem:[#allocation5 + $0x18] sm:$0xff] }
  0x39   :  { %312 = vmatprep.mubr.msk.f32.mxu1 %vm79_vm0, %v62_v5  ;;  %v66_v9 = vld [vmem:[#allocation5 + $0x10] sm:$0xff]  ;;  %301 = vmatprep.mubr.msk.f32.mxu0 %vm79_vm0, %v62_v5  ;;  %v315_v10 = vpack.c.bf16 %v65_v8, %v64_v7  ;;  %v63_v13 = vld [vmem:[#allocation2 + $0x8] sm:$0xff] }
  0x3a   :  { %324 = vmatprep.subr.bf16.mxu1 %v323_v3  ;;  %v319_v12 = vpack.c.bf16 %v67_v11, %v66_v9  ;;  %v278_v14 = vld [vmem:[%s552_s4] ss:$0 sm:$0xff]  ;;  %s440_s4 = smov [#allocation8]  }
  0x3b   :  { %326 = vmatpush3.bf16.msra.mxu1 %v323_v3  ;;  %316 = vmatprep.subr.bf16.mxu0 %v315_v10  ;;  %v275_v23 = vld [vmem:[%s551_s3] ss:$0 sm:$0xff]  ;;  %s262_s9 = sshll.u32 %s440_s4, 4  ;;  %s263_s9 = int_to_ptr.vmem [resolvable:$true] %s262_s9 }
  0x3c   :  { %328 = vmatprep.subr.bf16.mxu1 %v327_v6  ;;  %318 = vmatpush3.bf16.msra.mxu0 %v315_v10  ;;  %s407_s10 = scalar_lea.vmem %s263_s9, 256  ;;  %p412_p11 = scmp.lt.s32.totalorder %s263_s9, %s263_s9 }
  0x3d   :  { %320 = vmatprep.subr.bf16.mxu0 %v319_v12  ;;  %p408_p10 = scmp.ne.s32.totalorder %s263_s9, %s407_s10  ;;  %p413_p12 = scmp.lt.s32.totalorder %s407_s10, %s407_s10 }
  0x3f   :  { %330 = vmatpush3.bf16.msra.mxu1 %v327_v6  ;;  %p414_p13 = por %p413_p12, %p412_p11 }
  0x40   :  { %322 = vmatpush3.bf16.msra.mxu0 %v319_v12 }
  0x41   :  { %p415_p0 = pnand %p414_p13, %p408_p10 }
  0x42   :  { %313 = vmatmul.mubr.msk.f32.vlgmr.msra.gmra.mrb[0].mxu1 %vm79_vm0, %v63_v13 }
  0x43   :  { %302 = vmatmul.mubr.msk.f32.vlgmr.msra.gmra.mrb[0].mxu0 %vm79_vm0, %v63_v13 }
 0x115   :  { %v314_v15 = vpop.f32.mrb[0].mxu1 }
 0x116   :  { %v240_v16 = vadd.f32 %v314_v15, %v278_v14  ;;  %v234_v17 = vpop.f32.mrb[1].mxu1  ;;  %v303_v19 = vpop.f32.mrb[0].mxu0 }
 0x117   :  { %v235_v18 = vadd.f32 %v278_v14, %v234_v17  ;;  %v152_v21 = vpop.f32.mrb[1].mxu0  ;;  %v158_v28 = vadd.f32 %v303_v19, %v275_v23 }
 0x118   :  { %v246_v20 = vmul.f32 0.70710677, %v240_v16  ;;  %v244_v26 = vmul.f32 0.5, %v240_v16  ;;  %v153_v31 = vadd.f32 %v275_v23, %v152_v21 }
 0x119   :  { %v245_v22 = vmul.f32 0.70710677, %v235_v18  ;;  %v243_v29 = vmul.f32 0.5, %v235_v18 }
 0x11a   :  { %337 = verf.f32 %v246_v20 }
 0x11b   :  { %339 = verf.f32 %v245_v22 }
 0x124   :  { %v338_v24 = vpop.eup %337 }
 0x125   :  { %v340_v25 = vpop.eup %339  ;;  %v250_v27 = vadd.f32 1.0, %v338_v24 }
 0x126   :  { %v249_v30 = vadd.f32 1.0, %v340_v25 }
 0x127   :  { %v252_v32 = vmul.f32 %v250_v27, %v244_v26 }
 0x128   :  { %v251_v33 = vmul.f32 %v249_v30, %v243_v29 }
 0x129   :  { %v254_v34 = vmul.f32 %v252_v32, %v158_v28 }
 0x12a   :  { %v253_v35 = vmul.f32 %v251_v33, %v153_v31 }
 0x12b   :  { %256 = vst [vmem:[#allocation8 + $0x8] sm:$0xff] %v254_v34 }
 0x12c   :  { %255 = vst [vmem:[#allocation8] sm:$0xff] %v253_v35 }
 0x12d   :  { %418 = shalt.err (!%p415_p0)
}
 0x12e   :  { %s419_s12 = scalar_lea.hbm %s553_s5, 256 }
 0x12f   :  { %p420_p1 = scmp.ne.s32.totalorder %s553_s5, %s419_s12  ;;  %p423_p2 = scmp.lt.u32.totalorder %s419_s12, %s553_s5 }
 0x131   :  { %p425_p3 = pnand %p423_p2, %p420_p1 }
 0x133   :  { %428 = shalt.err (!%p425_p3)
}
 0x134   :  { %268 = dma.vmem_to_hbm [thread:$0]  %s263_s9, 256, %s553_s5, [#allocation4], %s437_s30, %s437_s30, %s438_s6  }
 0x135   :  { %433 = dma.done.wait [#allocation4], 256  }
 0x136   :  { %434 = vsyncadd [#allocation4], 4294967040 }
 0x137   :  { %272 = vsyncpa [#allocation3], 1 }
 0x138   :  { %273 = vsyncpa [#allocation6], 1 }
 0x139   :  { %274 = vsyncpa [#allocation4], 1 }

</bundles_post_ra>
